<compile_context>
chip_gen: v7x
topology: tpu7x:2x2x1
jax: 0.10.0
libtpu: 0.0.40
codegen_flags: <defaults>
</compile_context>

<pallas_src>
import jax
import jax.numpy as jnp
from jax.experimental import pallas as pl
from jax.experimental.pallas import tpu as pltpu


def xw_kernel(x_ref, wagg_ref, o_ref):
    # XW = X @ W_agg for one row tile (bf16 in, f32 accumulate, bf16 out).
    o_ref[...] = jnp.dot(
        x_ref[...], wagg_ref[...], preferred_element_type=jnp.float32
    ).astype(o_ref.dtype)


def fixedrc_kernel(a_ref, xw_ref, x_ref, w_ref, o_ref):
    # grid = (row tiles [parallel], K tiles over N [arbitrary, reduction]).
    # o_ref's block index is constant across k, so its block stays VMEM
    # resident and doubles as the f32 accumulator (no scratch needed).
    k = pl.program_id(1)

    @pl.when(k == 0)
    def _():
        o_ref[...] = jnp.zeros_like(o_ref)

    tk = a_ref.shape[1]
    if xw_ref.shape[0] == tk:
        # Streamed fallback: xw_ref already is the k-th (TK, D_pad) tile.
        xw = xw_ref[...]
    else:
        # VMEM-resident XW: slice the k-th chunk in place (no HBM re-stream).
        start = pl.multiple_of(k * tk, tk)
        xw = xw_ref[pl.ds(start, tk), :]

    # (TM, TK) @ (TK, D_pad) on the MXU, f32 accumulation into o_ref.
    o_ref[...] += jnp.dot(a_ref[...], xw, preferred_element_type=jnp.float32)

    @pl.when(k == pl.num_programs(1) - 1)
    def _():
        h = jnp.maximum(o_ref[...], 0.0)          # sigma = ReLU
        X = x_ref[...]                            # (TM, D_pad) f32 residual
        wv = w_ref[...]                           # (TM, 1) diag of xi
        # diag(w)@h + (I - diag(w))@X == X + w*(h - X)  (row-wise scaling)
        o_ref[...] = X + wv * (h - X)


def _round_up(x, m):
    return ((x + m - 1) // m) * m


def _pad_cast(a, rows, cols, dtype):
    """Pad a 2-D array to (rows, cols) with zeros and cast; no-op when already
    padded and typed (lets callers keep a persistent bf16 adjacency)."""
    if a.shape == (rows, cols) and a.dtype == dtype:
        return a
    return jnp.zeros((rows, cols), dtype).at[:a.shape[0], :a.shape[1]].set(
        a.astype(dtype))


def fixed_rc_forward(X, A_hat, W_agg, w, *, mxu_dtype=jnp.bfloat16,
                     tile=512, xw_resident_max_bytes=12 << 20):
    N, D = X.shape
    f32 = jnp.float32
    isz = jnp.dtype(mxu_dtype).itemsize

    # Lane-dense feature axis (>=128) and sublane/tile-aligned row axis.
    D_pad = max(128, _round_up(D, 128))
    N_pad_min = _round_up(N, 16)          # 16: bf16 sublane packing
    if N_pad_min <= tile:
        TM = TK = N_pad_min
        N_pad = N_pad_min
    else:
        TM = TK = tile
        N_pad = _round_up(N, tile)        # N > tile  =>  >= 2 row tiles (v7x)

    X_pad = _pad_cast(X, N_pad, D_pad, f32)
    X_mxu = X_pad.astype(mxu_dtype)
    # A_hat is ideally passed in already as bf16 (persistent, cast once
    # outside jit); _pad_cast is then a cheap pad (or a no-op when aligned).
    A_pad = _pad_cast(A_hat, N_pad, N_pad, mxu_dtype)
    W_pad = _pad_cast(W_agg, D_pad, D_pad, mxu_dtype)
    w_pad = jnp.zeros((N_pad, 1), f32).at[:N, 0].set(w.astype(f32))

    # ---- Stage 1: XW = X @ W_agg (hoisted: A @ (X @ W) == (A @ X) @ W) ----
    if D_pad * D_pad * isz >= (8 << 20):
        # Large resident W_agg: single-buffer it (block index never changes).
        wagg_spec = pl.BlockSpec((D_pad, D_pad), lambda i: (0, 0),
                                 pipeline_mode=pl.Buffered(1))
    else:
        wagg_spec = pl.BlockSpec((D_pad, D_pad), lambda i: (0, 0))

    xw = pl.pallas_call(
        xw_kernel,
        out_shape=jax.ShapeDtypeStruct((N_pad, D_pad), mxu_dtype),
        grid_spec=pltpu.PrefetchScalarGridSpec(
            num_scalar_prefetch=0,
            grid=(N_pad // TM,),
            in_specs=[
                pl.BlockSpec((TM, D_pad), lambda i: (i, 0)),   # X tile
                wagg_spec,                                     # W_agg resident
            ],
            out_specs=pl.BlockSpec((TM, D_pad), lambda i: (i, 0)),
        ),
        compiler_params=pltpu.CompilerParams(
            dimension_semantics=("parallel",)),
        cost_estimate=pl.CostEstimate(
            flops=2 * N_pad * D_pad * D_pad,
            transcendentals=0,
            bytes_accessed=(2 * N_pad * D_pad + D_pad * D_pad) * isz),
    )(X_mxu, W_pad)

    # ---- Stage 2: out = X + w * (relu(A_hat @ XW) - X) ----
    xw_bytes = N_pad * D_pad * isz
    xw_resident = xw_bytes <= xw_resident_max_bytes
    if xw_resident:
        if xw_bytes >= (4 << 20):
            xw_spec = pl.BlockSpec((N_pad, D_pad), lambda i, k: (0, 0),
                                   pipeline_mode=pl.Buffered(1))
            xw_vmem = xw_bytes
        else:
            xw_spec = pl.BlockSpec((N_pad, D_pad), lambda i, k: (0, 0))
            xw_vmem = 2 * xw_bytes
        xw_hbm = xw_bytes                           # fetched once, stays resident
    else:
        # TODO(synk): for huge N*D, fusing Stage 1 into Stage 2 (resident
        # W_agg + per-k X tiles) would also remove the XW HBM round trip.
        xw_spec = pl.BlockSpec((TK, D_pad), lambda i, k: (k, 0))
        xw_vmem = 2 * TK * D_pad * isz
        xw_hbm = (N_pad // TM) * xw_bytes           # re-read once per row tile

    vmem_est = (2 * TM * TK * isz          # A tiles (double-buffered)
                + xw_vmem                  # XW (resident or streamed tiles)
                + 2 * TM * D_pad * 4       # X residual tiles (f32)
                + 2 * TM * 128 * 4         # w tiles (lane-padded)
                + 2 * TM * D_pad * 4)      # out tiles (also the accumulator)
    # 48 MiB cap: headroom on v7x (64 MiB physical), far under v5e/v6e 128 MiB.
    vmem_limit = int(min(max(2 * vmem_est, 16 << 20), 48 << 20))

    out = pl.pallas_call(
        fixedrc_kernel,
        out_shape=jax.ShapeDtypeStruct((N_pad, D_pad), f32),
        grid_spec=pltpu.PrefetchScalarGridSpec(
            num_scalar_prefetch=0,
            grid=(N_pad // TM, N_pad // TK),
            in_specs=[
                pl.BlockSpec((TM, TK), lambda i, k: (i, k)),      # A_hat (bf16)
                xw_spec,                                          # XW
                pl.BlockSpec((TM, D_pad), lambda i, k: (i, 0)),   # X (residual)
                pl.BlockSpec((TM, 1), lambda i, k: (i, 0)),       # w (diag of xi)
            ],
            out_specs=pl.BlockSpec((TM, D_pad), lambda i, k: (i, 0)),
        ),
        compiler_params=pltpu.CompilerParams(
            dimension_semantics=("parallel", "arbitrary"),
            vmem_limit_bytes=vmem_limit),
        cost_estimate=pl.CostEstimate(
            flops=2 * N_pad * N_pad * D_pad,
            transcendentals=0,
            bytes_accessed=(N_pad * N_pad * isz       # A_hat stream
                            + xw_hbm                  # XW
                            + N_pad * D_pad * 4       # X residual
                            + N_pad * 4               # w
                            + N_pad * D_pad * 4)),    # output
    )(A_pad, xw, X_pad, w_pad)

    return out[:N, :D]


def fixed_rc_reference(X, A_hat, W_agg, w, mxu_dtype=jnp.float32):
    # Pure-JAX reference; mxu_dtype mimics the kernel's operand casting.
    Xc, Ac, Wc = (t.astype(mxu_dtype) for t in (X, A_hat, W_agg))
    xw = jnp.dot(Xc, Wc, preferred_element_type=jnp.float32).astype(mxu_dtype)
    h = jnp.dot(Ac, xw, preferred_element_type=jnp.float32)
    h = jnp.maximum(h, 0.0)
    return X + w[:, None] * (h - X)


if __name__ == "__main__":
    key = jax.random.PRNGKey(0)
    k_x, k_a, k_wagg, k_w = jax.random.split(key, 4)

    N, D = 8, 32  # small shapes: 8 nodes, 32 features

    X = jax.random.normal(k_x, (N, D), dtype=jnp.float32)

    # Symmetric-normalized adjacency with self-loops (deterministic).
    A = (jax.random.uniform(k_a, (N, N)) > 0.5).astype(jnp.float32)
    A = jnp.maximum(A, A.T) + jnp.eye(N, dtype=jnp.float32)
    deg = jnp.sum(A, axis=1)
    d_inv_sqrt = 1.0 / jnp.sqrt(deg)
    A_hat = d_inv_sqrt[:, None] * A * d_inv_sqrt[None, :]

    # Aggregation weight and fixed residual-connection weights.
    W_agg = jax.random.normal(k_wagg, (D, D), dtype=jnp.float32) * 0.1
    w = jax.random.uniform(k_w, (N,), dtype=jnp.float32)  # in [0, 1)

    # Persistent bf16 adjacency: the graph is static across calls, so cast it
    # once outside jit; the kernel's dominant HBM stream is then 2 B/elem.
    A_bf16 = A_hat.astype(jnp.bfloat16)

    # TODO(synk): at these demo shapes the real win is batching many graphs
    # per call (block-diagonal A / leading batch axis) and packing small-D
    # features along the lane axis; a single (8, 32) graph is launch-bound.
    out = jax.jit(fixed_rc_forward)(X, A_bf16, W_agg, w)
    out = jax.block_until_ready(out)
    assert out.shape == (N, D)

    # Tight check vs a reference that mimics the kernel's bf16 MXU operands.
    ref_bf16 = fixed_rc_reference(X, A_hat, W_agg, w, mxu_dtype=jnp.bfloat16)
    assert jnp.allclose(out, ref_bf16, atol=2e-3, rtol=2e-3)

    # Looser sanity check vs the exact f32 math of the original module.
    ref_f32 = fixed_rc_reference(X, A_hat, W_agg, w, mxu_dtype=jnp.float32)
    assert jnp.allclose(out, ref_f32, atol=1e-1, rtol=1e-1)

    print("KERNEL_OK")
</pallas_src>

<mosaic_0001>
module attributes {stable_mosaic.version = 11 : i64} {
  func.func @xw_kernel(%arg0: i32, %arg1: memref<16x128xbf16, #tpu.memory_space<vmem>>, %arg2: memref<128x128xbf16, #tpu.memory_space<vmem>>, %arg3: memref<16x128xbf16, #tpu.memory_space<vmem>>) attributes {dimension_semantics = [#tpu.dimension_semantics<parallel>], iteration_bounds = array<i64: 1>, scalar_prefetch = 0 : i64, scratch_operands = 0 : i64, tpu.core_type = #tpu.core_type<tc>, window_params = [{transform_indices = @transform_0, window_bounds = array<i64: 16, 128>}, {pipeline_mode = #tpu.pipeline_mode<synchronous>, transform_indices = @transform_1, window_bounds = array<i64: 128, 128>}, {transform_indices = @transform_2, window_bounds = array<i64: 16, 128>}]} {
    %c0 = arith.constant 0 : index
    %c0_0 = arith.constant 0 : index
    %0 = vector.load %arg1[%c0, %c0_0] : memref<16x128xbf16, #tpu.memory_space<vmem>>, vector<16x128xbf16>
    %c0_1 = arith.constant 0 : index
    %c0_2 = arith.constant 0 : index
    %1 = vector.load %arg2[%c0_1, %c0_2] : memref<128x128xbf16, #tpu.memory_space<vmem>>, vector<128x128xbf16>
    %cst = arith.constant dense<0.000000e+00> : vector<16x128xf32>
    %2 = tpu.matmul %0, %1, %cst {dimension_numbers = #tpu.dot_dimension_numbers<[1], [0], [0], [1], [0, 0, 1, 1], [], []>} : vector<16x128xbf16>, vector<128x128xbf16>, vector<16x128xf32> -> vector<16x128xf32>
    %3 = arith.truncf %2 : vector<16x128xf32> to vector<16x128xbf16>
    %c0_3 = arith.constant 0 : index
    %c0_4 = arith.constant 0 : index
    %4 = vector.load %arg3[%c0_3, %c0_4] : memref<16x128xbf16, #tpu.memory_space<vmem>>, vector<16x128xbf16>
    tpu.vector_store %arg3[%c0_3, %c0_4], %3 {strides = array<i32>} : memref<16x128xbf16, #tpu.memory_space<vmem>>, vector<16x128xbf16>,
    return
  }
  func.func @transform_0(%arg0: i32) -> (i32, i32) {
    %c0_i32 = arith.constant 0 : i32
    %c0_i32_0 = arith.constant 0 : i32
    return %arg0, %c0_i32 : i32, i32
  }
  func.func @transform_1(%arg0: i32) -> (i32, i32) {
    %c0_i32 = arith.constant 0 : i32
    %c0_i32_0 = arith.constant 0 : i32
    %c0_i32_1 = arith.constant 0 : i32
    return %c0_i32, %c0_i32_0 : i32, i32
  }
  func.func @transform_2(%arg0: i32) -> (i32, i32) {
    %c0_i32 = arith.constant 0 : i32
    %c0_i32_0 = arith.constant 0 : i32
    return %arg0, %c0_i32 : i32, i32
  }
}

module attributes {stable_mosaic.version = 11 : i64} {
  func.func @fixedrc_kernel(%arg0: i32, %arg1: i32, %arg2: memref<16x16xbf16, #tpu.memory_space<vmem>>, %arg3: memref<16x128xbf16, #tpu.memory_space<vmem>>, %arg4: memref<16x128xf32, #tpu.memory_space<vmem>>, %arg5: memref<16x1xf32, #tpu.memory_space<vmem>>, %arg6: memref<16x128xf32, #tpu.memory_space<vmem>>) attributes {dimension_semantics = [#tpu.dimension_semantics<parallel>, #tpu.dimension_semantics<arbitrary>], iteration_bounds = array<i64: 1, 1>, scalar_prefetch = 0 : i64, scratch_operands = 0 : i64, tpu.core_type = #tpu.core_type<tc>, window_params = [{transform_indices = @transform_0, window_bounds = array<i64: 16, 16>}, {pipeline_mode = #tpu.pipeline_mode<synchronous>, transform_indices = @transform_1, window_bounds = array<i64: 16, 128>}, {transform_indices = @transform_2, window_bounds = array<i64: 16, 128>}, {transform_indices = @transform_3, window_bounds = array<i64: 16, 1>}, {transform_indices = @transform_4, window_bounds = array<i64: 16, 128>}]} {
    %c0_i32 = arith.constant 0 : i32
    %0 = arith.cmpi eq, %arg1, %c0_i32 : i32
    %1 = arith.extui %0 : i1 to i32
    %c0_i32_0 = arith.constant 0 : i32
    %2 = arith.cmpi ne, %1, %c0_i32_0 : i32
    scf.if %2 {
      %cst_10 = arith.constant 0.000000e+00 : f32
      %12 = vector.broadcast %cst_10 : f32 to vector<16x128xf32>
      %c0_11 = arith.constant 0 : index
      %c0_12 = arith.constant 0 : index
      %13 = vector.load %arg6[%c0_11, %c0_12] : memref<16x128xf32, #tpu.memory_space<vmem>>, vector<16x128xf32>
      tpu.vector_store %arg6[%c0_11, %c0_12], %12 {strides = array<i32>} : memref<16x128xf32, #tpu.memory_space<vmem>>, vector<16x128xf32>,
    } else {
    }
    %c0 = arith.constant 0 : index
    %c0_1 = arith.constant 0 : index
    %3 = vector.load %arg3[%c0, %c0_1] : memref<16x128xbf16, #tpu.memory_space<vmem>>, vector<16x128xbf16>
    %c0_2 = arith.constant 0 : index
    %c0_3 = arith.constant 0 : index
    %4 = vector.load %arg6[%c0_2, %c0_3] : memref<16x128xf32, #tpu.memory_space<vmem>>, vector<16x128xf32>
    %c0_4 = arith.constant 0 : index
    %c0_5 = arith.constant 0 : index
    %5 = vector.load %arg2[%c0_4, %c0_5] : memref<16x16xbf16, #tpu.memory_space<vmem>>, vector<16x16xbf16>
    %cst = arith.constant dense<0.000000e+00> : vector<16x128xf32>
    %6 = tpu.matmul %5, %3, %cst {dimension_numbers = #tpu.dot_dimension_numbers<[1], [0], [0], [1], [0, 0, 1, 1], [], []>} : vector<16x16xbf16>, vector<16x128xbf16>, vector<16x128xf32> -> vector<16x128xf32>
    %7 = arith.addf %4, %6 : vector<16x128xf32>
    %c0_6 = arith.constant 0 : index
    %c0_7 = arith.constant 0 : index
    %8 = vector.load %arg6[%c0_6, %c0_7] : memref<16x128xf32, #tpu.memory_space<vmem>>, vector<16x128xf32>
    tpu.vector_store %arg6[%c0_6, %c0_7], %7 {strides = array<i32>} : memref<16x128xf32, #tpu.memory_space<vmem>>, vector<16x128xf32>,
    %c0_i32_8 = arith.constant 0 : i32
    %9 = arith.cmpi eq, %arg1, %c0_i32_8 : i32
    %10 = arith.extui %9 : i1 to i32
    %c0_i32_9 = arith.constant 0 : i32
    %11 = arith.cmpi ne, %10, %c0_i32_9 : i32
    scf.if %11 {
      %c0_10 = arith.constant 0 : index
      %c0_11 = arith.constant 0 : index
      %12 = vector.load %arg6[%c0_10, %c0_11] : memref<16x128xf32, #tpu.memory_space<vmem>>, vector<16x128xf32>
      %cst_12 = arith.constant 0.000000e+00 : f32
      %13 = vector.broadcast %cst_12 : f32 to vector<16x128xf32>
      %14 = arith.maximumf %12, %13 : vector<16x128xf32>
      %c0_13 = arith.constant 0 : index
      %c0_14 = arith.constant 0 : index
      %15 = vector.load %arg4[%c0_13, %c0_14] : memref<16x128xf32, #tpu.memory_space<vmem>>, vector<16x128xf32>
      %c0_15 = arith.constant 0 : index
      %c0_16 = arith.constant 0 : index
      %16 = vector.load %arg5[%c0_15, %c0_16] : memref<16x1xf32, #tpu.memory_space<vmem>>, vector<16x1xf32>
      %17 = arith.subf %14, %15 : vector<16x128xf32>
      %18 = vector.broadcast %16 : vector<16x1xf32> to vector<16x128xf32>
      %19 = arith.mulf %18, %17 : vector<16x128xf32>
      %20 = arith.addf %15, %19 : vector<16x128xf32>
      %c0_17 = arith.constant 0 : index
      %c0_18 = arith.constant 0 : index
      %21 = vector.load %arg6[%c0_17, %c0_18] : memref<16x128xf32, #tpu.memory_space<vmem>>, vector<16x128xf32>
      tpu.vector_store %arg6[%c0_17, %c0_18], %20 {strides = array<i32>} : memref<16x128xf32, #tpu.memory_space<vmem>>, vector<16x128xf32>,
    } else {
    }
    return
  }
  func.func @transform_0(%arg0: i32, %arg1: i32) -> (i32, i32) {
    %c0_i32 = arith.constant 0 : i32
    return %arg0, %arg1 : i32, i32
  }
  func.func @transform_1(%arg0: i32, %arg1: i32) -> (i32, i32) {
    %c0_i32 = arith.constant 0 : i32
    %c0_i32_0 = arith.constant 0 : i32
    %c0_i32_1 = arith.constant 0 : i32
    return %c0_i32, %c0_i32_0 : i32, i32
  }
  func.func @transform_2(%arg0: i32, %arg1: i32) -> (i32, i32) {
    %c0_i32 = arith.constant 0 : i32
    %c0_i32_0 = arith.constant 0 : i32
    return %arg0, %c0_i32 : i32, i32
  }
  func.func @transform_3(%arg0: i32, %arg1: i32) -> (i32, i32) {
    %c0_i32 = arith.constant 0 : i32
    %c0_i32_0 = arith.constant 0 : i32
    return %arg0, %c0_i32 : i32, i32
  }
  func.func @transform_4(%arg0: i32, %arg1: i32) -> (i32, i32) {
    %c0_i32 = arith.constant 0 : i32
    %c0_i32_0 = arith.constant 0 : i32
    return %arg0, %c0_i32 : i32, i32
  }
}

</mosaic_0001>

<bundles_post_ra>
// kernel: fixed_rc_forward.3
= control target key start
LH: loop header
LB: loop body
LE: loop exit
PB: predicated region body
PF: predicated region fallthrough
CT: control target
= control target key end

     0   :  { %v140_v0 = vmov 0.0   ;;  %vm141_vm0 = vmmov 0   ;;  %v142_v3 = vmov 0   ;;  %vm41_vm1 = vcmask 130048   ;;  %s192_s1 = inlined_call_operand.vmem [shape: bf16[16,128], index: 1, kind: input, shape index: {}]   ;;  %s193_s0 = inlined_call_operand.vmem [shape: bf16[16,16], index: 0, kind: input, shape index: {}]   ;;  %s194_s3 = inlined_call_operand.vmem [shape: f32[16,1], index: 3, kind: input, shape index: {}]   ;;  %s195_s2 = inlined_call_operand.vmem [shape: f32[16,128], index: 2, kind: input, shape index: {}]   ;;  %s196_s4 = inlined_call_operand.vmem [shape: f32[16,128], index: 4, kind: output, shape index: {}]  }
   0x1   :  { %128 = vmatprep.subr.bf16.mxu0 %v140_v0  ;;  %v138_v1 = vld [vmem:[%s192_s1] sm:$0xff]   ;;  %130 = vmatprep.mubr.msk.bf16.mxu0 %vm141_vm0, %v140_v0  ;;  %v100_v5 = vld [vmem:[%s194_s3 + $0x8] sm:$0xff] }
   0x2   :  { %v139_v2 = vld [vmem:[%s193_s0] sm:$0xff]   ;;  %137 = vset.pattern.permute.xlu0 %v142_v3  ;;  %129 = vmatpush3.bf16.msra.mxu0 %v138_v1  ;;  %v98_v13 = vld [vmem:[%s195_s2 + $0x8] sm:$0xff] }
   0x3   :  { %v99_v4 = vld [vmem:[%s194_s3] sm:$0xff] }
   0x4   :  { %105 = vperm.xlu0 %137, %v99_v4   ;;  %v97_v10 = vld [vmem:[%s195_s2] sm:$0xff] }
   0x5   :  { %131 = vmatmul.mubr.msk.bf16.vlgmr.msra.gmra.mrb[0].mxu0 %vm41_vm1, %v139_v2 }
   0x8   :  { %110 = vperm.xlu0 %137, %v100_v5  }
  0x83   :  { %v106_v9 = vpop.permute.xlu0 %105 }
  0x87   :  { %v111_v18 = vpop.permute.xlu0 %110 }
  0xd8   :  { %v79_v6 = vpop.f32.mrb[0].mxu0 }
  0xd9   :  { %v132_v7 = vpop.f32.mrb[1].mxu0  ;;  %v95_v12 = vmax.f32 %v79_v6, 0.0 }
  0xda   :  { %v82_v8 = vpop.f32.mrb[2].mxu0 }
  0xdb   :  { %v133_v11 = vpop.f32.mrb[3].mxu0  ;;  %v101_v14 = vsub.f32 %v95_v12, %v97_v10  ;;  %v96_v15 = vmax.f32 %v82_v8, 0.0 }
  0xdd   :  { %v113_v16 = vmul.f32 %v106_v9, %v101_v14  ;;  %v102_v17 = vsub.f32 %v96_v15, %v98_v13 }
  0xdf   :  { %v115_v19 = vadd.f32 %v113_v16, %v97_v10  ;;  %v114_v20 = vmul.f32 %v111_v18, %v102_v17 }
  0xe1   :  { %117 = vst [vmem:[%s196_s4] sm:$0xff] %v115_v19  ;;  %v116_v21 = vadd.f32 %v114_v20, %v98_v13 }
  0xe3   :  { %118 = vst [vmem:[%s196_s4 + $0x8] sm:$0xff] %v116_v21 }

// kernel: fixed_rc_forward.2
= control target key start
LH: loop header
LB: loop body
LE: loop exit
PB: predicated region body
PF: predicated region fallthrough
CT: control target
= control target key end

     0   :  { %v197_v0 = vmov 0.0   ;;  %vm198_vm0 = vmmov 0   ;;  %s244_s1 = inlined_call_operand.vmem [shape: bf16[128,128], index: 1, kind: input, shape index: {}]   ;;  %s245_s0 = inlined_call_operand.vmem [shape: bf16[16,128], index: 0, kind: input, shape index: {}]   ;;  %s246_s2 = inlined_call_operand.vmem [shape: bf16[16,128], index: 2, kind: output, shape index: {}]  }
   0x1   :  { %166 = vmatprep.subr.bf16.mxu0 %v197_v0  ;;  %v188_v1 = vld [vmem:[%s244_s1] sm:$0xff]   ;;  %182 = vmatprep.mubr.msk.bf16.mxu0 %vm198_vm0, %v197_v0  ;;  %v189_v2 = vld [vmem:[%s244_s1 + $0x8] sm:$0xff]   ;;  %v190_v3 = vld [vmem:[%s244_s1 + $0x10] sm:$0xff]  }
   0x2   :  { %167 = vmatpush3.bf16.msra.mxu0 %v188_v1  ;;  %v191_v4 = vld [vmem:[%s244_s1 + $0x18] sm:$0xff]   ;;  %v192_v5 = vld [vmem:[%s244_s1 + $0x20] sm:$0xff]   ;;  %v193_v6 = vld [vmem:[%s244_s1 + $0x28] sm:$0xff]  }
   0x3   :  { %168 = vmatprep.subr.bf16.mxu0 %v197_v0  ;;  %v194_v7 = vld [vmem:[%s244_s1 + $0x30] sm:$0xff]   ;;  %v195_v8 = vld [vmem:[%s244_s1 + $0x38] sm:$0xff]   ;;  %v196_v9 = vld [vmem:[%s245_s0] sm:$0xff]  }
   0x6   :  { %169 = vmatpush3.bf16.msra.mxu0 %v189_v2 }
   0x7   :  { %170 = vmatprep.subr.bf16.mxu0 %v197_v0 }
   0xa   :  { %171 = vmatpush3.bf16.msra.mxu0 %v190_v3 }
   0xb   :  { %172 = vmatprep.subr.bf16.mxu0 %v197_v0 }
   0xe   :  { %173 = vmatpush3.bf16.msra.mxu0 %v191_v4 }
   0xf   :  { %174 = vmatprep.subr.bf16.mxu0 %v197_v0 }
  0x12   :  { %175 = vmatpush3.bf16.msra.mxu0 %v192_v5 }
  0x13   :  { %176 = vmatprep.subr.bf16.mxu0 %v197_v0 }
  0x16   :  { %177 = vmatpush3.bf16.msra.mxu0 %v193_v6 }
  0x17   :  { %178 = vmatprep.subr.bf16.mxu0 %v197_v0 }
  0x1a   :  { %179 = vmatpush3.bf16.msra.mxu0 %v194_v7 }
  0x1b   :  { %180 = vmatprep.subr.bf16.mxu0 %v197_v0 }
  0x1e   :  { %181 = vmatpush3.bf16.msra.mxu0 %v195_v8 }
  0x21   :  { %183 = vmatmul.mubr.bf16.vlgmr.msra.gmra.mrb[0].mxu0 %v196_v9 }
  0xf4   :  { %v118_v10 = vpop.f32.mrb[0].mxu0 }
  0xf5   :  { %v184_v11 = vpop.f32.mrb[1].mxu0 }
  0xf6   :  { %v121_v12 = vpop.f32.mrb[2].mxu0 }
  0xf7   :  { %v155_v13 = vpack.c.bf16 %v121_v12, %v118_v10  ;;  %v185_v14 = vpop.f32.mrb[3].mxu0 }
  0xf9   :  { %156 = vst [vmem:[%s246_s2] sm:$0xff] %v155_v13  }

</bundles_post_ra>
